<compile_context>
chip_gen: v7x
topology: tpu7x:2x2x1
jax: 0.10.0
libtpu: 0.0.40
codegen_flags: <defaults>
</compile_context>

<pallas_src>
import math

import jax
import jax.numpy as jnp
from jax.experimental import pallas as pl
from jax.experimental.pallas import tpu as pltpu

_HIGHEST = jax.lax.Precision.HIGHEST


# ----------------------------------------------------------------------------------
# Synaptic filter + parameter init (mirrors SNNLayer / LayeredSNN construction)
# ----------------------------------------------------------------------------------
def raised_cosine_filter(tau, n_basis, mu):
    # TODO(synk): the real `filters.raised_cosine_pillow_08` module is not available;
    # this is a deterministic raised-cosine basis in the same (tau, n_basis) layout the
    # torch code uses after `.transpose(0, 1)` (rows = time, cols = basis).
    t = jnp.arange(tau, dtype=jnp.float32)[:, None]
    centers = jnp.linspace(0.0, float(tau - 1), n_basis, dtype=jnp.float32)[None, :]
    width = max(float(tau) / (n_basis + 1.0), 1.0) / max(float(mu), 1e-3)
    arg = jnp.clip((t - centers) * (math.pi / (2.0 * width)), -math.pi, math.pi)
    return 0.5 * (1.0 + jnp.cos(arg))


def init_snn_layer(key, n_in, n_out, n_basis_ff, n_basis_fb, tau_ff, tau_fb, mu):
    # Xavier bound exactly as SNNLayer.get_xavier (fan computed from ff_weights).
    fan_in = n_in * n_basis_ff
    fan_out = n_out * n_basis_ff
    a = math.sqrt(3.0) * math.sqrt(2.0 / float(fan_in + fan_out))
    k1, k2, k3 = jax.random.split(key, 3)
    return dict(
        ff_w=jax.random.uniform(k1, (n_out, n_in, n_basis_ff), jnp.float32, -a, a),
        fb_w=jax.random.uniform(k2, (n_out, n_basis_fb), jnp.float32, -a, a),
        bias=jax.random.uniform(k3, (n_out,), jnp.float32, -a, a),
        ff_filter=raised_cosine_filter(tau_ff, n_basis_ff, mu),   # (tau_ff, nb_ff)
        fb_filter=raised_cosine_filter(tau_fb, n_basis_fb, mu),   # (tau_fb, nb_fb)
        hist=jnp.zeros((n_out, 2), jnp.float32),                  # spiking_history
        tau_ff=int(tau_ff), tau_fb=int(tau_fb),
    )


# ----------------------------------------------------------------------------------
# One-time preparation: fold filters into the weights so the kernel is pure matmuls.
#
#   pot_ff[o] = sum_{i,b} W[o,i,b] * sum_t x[i,t] * f_flip[t,b]
#             = sum_{i,t} x[i,t] * A[i*W + t, o]        (A = weight x filter, exact)
#   pot_fb[o] = sum_t hist[o,t] * Hfb[o,t]  ->  h_row (1, n_out*Th) @ Mfb (block-diag)
#
# Re-run prepare_layered_snn only when parameters or history widths change.
# ----------------------------------------------------------------------------------
def _flip_slice(filt, width):
    # filter[:width], time-flipped (folds input_history.flip(-1) into the filter)
    return filt[:width][::-1, :]


def prepare_layered_snn(hidden_layers, out_layer, input_len):
    chain = list(hidden_layers) + [out_layer]
    n_chain = len(chain)
    n_hidden = len(hidden_layers)

    n_outs, n_ins, Ths, keeps = [], [], [], []
    for lyr in chain:
        n_out, n_in = lyr['ff_w'].shape[0], lyr['ff_w'].shape[1]
        Th = lyr['hist'].shape[1]
        mem = max(lyr['tau_ff'], lyr['tau_fb'])
        keep = Th if mem <= 1 else min(Th, mem - 1)     # torch: hist[:, 1 - mem:]
        n_outs.append(n_out); n_ins.append(n_in); Ths.append(Th); keeps.append(keep)
    max_n_out = max(n_outs)

    def make_A(lyr, width):
        # A[i*width + t, o] = sum_b ff_w[o, i, b] * f_flip[t, b]
        g = jnp.einsum('oib,tb->ito', lyr['ff_w'], _flip_slice(lyr['ff_filter'], width),
                       precision=_HIGHEST)
        return g.reshape(lyr['ff_w'].shape[1] * width, lyr['ff_w'].shape[0])

    A_pre, Mfb, bias_rows, A_fin, B_fin = [], [], [], [], []
    for l, lyr in enumerate(chain):
        # feed-forward matrix for the pre-update input (inputs_history for layer 0,
        # the previous layer's pre-update history otherwise)
        w_in = input_len if l == 0 else Ths[l - 1]
        A_pre.append(make_A(lyr, w_in))

        # feedback: Mfb[o*Th + t, o'] = delta(o, o') * sum_b fb_w[o, b] * fbf_flip[t, b]
        Th, n_out = Ths[l], n_outs[l]
        hfb = jnp.matmul(lyr['fb_w'], _flip_slice(lyr['fb_filter'], Th).T, precision=_HIGHEST)
        Mfb.append((hfb[:, :, None] * jnp.eye(n_out, dtype=jnp.float32)[:, None, :])
                   .reshape(n_out * Th, n_out))
        bias_rows.append(lyr['bias'][None, :])

        if l >= 1:
            # final-sample input = previous layer's *updated* history:
            #   old surviving columns -> A_fin (folded onto the old history row),
            #   freshly appended spike column -> B_fin
            Th_p, keep_p = Ths[l - 1], keeps[l - 1]
            w_new = keep_p + 1
            g = jnp.einsum('oib,tb->ito', lyr['ff_w'], _flip_slice(lyr['ff_filter'], w_new),
                           precision=_HIGHEST)                       # (n_in, w_new, n_out)
            pad = Th_p - keep_p
            A_fin.append(jnp.pad(g[:, :keep_p, :], ((0, 0), (pad, 0), (0, 0)))
                         .reshape(n_ins[l] * Th_p, n_outs[l]))
            B_fin.append(g[:, w_new - 1, :])                         # (n_in, n_out)

    return dict(n_chain=n_chain, n_hidden=n_hidden, n_outs=n_outs, Ths=Ths, keeps=keeps,
                max_n_out=max_n_out, input_len=int(input_len),
                A_pre=A_pre, Mfb=Mfb, bias_rows=bias_rows, A_fin=A_fin, B_fin=B_fin)


# ----------------------------------------------------------------------------------
# The single fused Pallas kernel
# ----------------------------------------------------------------------------------
def _build_fused_kernel(n_chain, n_outs):
    """Kernel over the whole layer chain; everything is (1, K) rows x (K, N) matrices.

    Output block `res` (3*n_chain, max_n_out):
      rows [0, n_chain)            : pre-update probabilities  (all samples i < last)
      rows [n_chain, 2*n_chain)    : final-sample probabilities
      rows [2*n_chain, 3*n_chain)  : final-sample Bernoulli spikes
    """
    n_fin = n_chain - 1

    def kernel(*refs):
        pos = 0

        def take(k):
            nonlocal pos
            out = refs[pos:pos + k]
            pos += k
            return out

        (x0_ref,) = take(1)
        h_refs = take(n_chain)
        a_pre_refs = take(n_chain)
        mfb_refs = take(n_chain)
        bias_refs = take(n_chain)
        a_fin_refs = take(n_fin)
        b_fin_refs = take(n_fin)
        (u_ref,) = take(1)
        (res_ref,) = take(1)

        res_ref[...] = jnp.zeros_like(res_ref)
        x0 = x0_ref[...]
        h = [r[...] for r in h_refs]

        # ---- pass 1: potentials with the pre-update state ------------------------
        # These are what every non-final sample returns (its spike draws are discarded
        # by the reference semantics), and the feedback/bias part is reused below.
        fbb, pre = [], []
        for l in range(n_chain):
            fb_l = (jnp.dot(h[l], mfb_refs[l][...], preferred_element_type=jnp.float32)
                    + bias_refs[l][...])
            x_in = x0 if l == 0 else h[l - 1]
            pot = jnp.dot(x_in, a_pre_refs[l][...], preferred_element_type=jnp.float32) + fb_l
            p = jax.nn.sigmoid(pot)
            fbb.append(fb_l)
            pre.append(p)
            res_ref[l:l + 1, 0:n_outs[l]] = p

        # ---- pass 2: final (state-updating) sample --------------------------------
        # Each layer sees the freshly updated history of the previous layer: the old
        # surviving columns via A_fin, the newly appended spike column via B_fin.
        spike_prev = None
        for l in range(n_chain):
            if l == 0:
                p = pre[0]                       # its input never changes
            else:
                pot = (jnp.dot(h[l - 1], a_fin_refs[l - 1][...],
                               preferred_element_type=jnp.float32)
                       + jnp.dot(spike_prev, b_fin_refs[l - 1][...],
                                 preferred_element_type=jnp.float32)
                       + fbb[l])
                p = jax.nn.sigmoid(pot)
            res_ref[n_chain + l:n_chain + l + 1, 0:n_outs[l]] = p
            u = u_ref[l:l + 1, 0:n_outs[l]]
            spike = (u < p).astype(jnp.float32)   # torch.bernoulli(sigmoid(potential))
            res_ref[2 * n_chain + l:2 * n_chain + l + 1, 0:n_outs[l]] = spike
            spike_prev = spike

    return kernel


# ----------------------------------------------------------------------------------
# Functional LayeredSNN.forward — one pallas_call per forward step.
# ----------------------------------------------------------------------------------
def layered_snn_forward(plan, hidden_layers, out_layer, inputs_history, uniforms,
                        target=None, n_samples=1):
    """Returns (net_probas, net_outputs, probas_hidden, outputs_hidden,
                new_hidden_layers, new_out_layer).

    `uniforms` is (n_chain, max_n_out) float32 in [0, 1): one row per layer, used for
    the final sample's Bernoulli draws (non-final samples discard their draws in the
    reference semantics, so no randomness is needed for them)."""
    chain = list(hidden_layers) + [out_layer]
    n_chain, n_hidden = plan['n_chain'], plan['n_hidden']
    n_outs, max_n_out = plan['n_outs'], plan['max_n_out']

    x0_row = inputs_history.astype(jnp.float32).reshape(1, -1)
    h_rows = [lyr['hist'].reshape(1, -1) for lyr in chain]
    u = uniforms.astype(jnp.float32)

    inputs = ([x0_row] + h_rows + plan['A_pre'] + plan['Mfb'] + plan['bias_rows']
              + plan['A_fin'] + plan['B_fin'] + [u])
    in_specs = [pl.BlockSpec(a.shape, lambda i: (0, 0)) for a in inputs]

    res = pl.pallas_call(
        _build_fused_kernel(n_chain, tuple(n_outs)),
        out_shape=jax.ShapeDtypeStruct((3 * n_chain, max_n_out), jnp.float32),
        grid=(1,),
        in_specs=in_specs,
        out_specs=pl.BlockSpec((3 * n_chain, max_n_out), lambda i: (0, 0)),
        compiler_params=pltpu.CompilerParams(dimension_semantics=("arbitrary",)),
    )(*inputs)

    pre = [res[l, :n_outs[l]] for l in range(n_chain)]
    fin = [res[n_chain + l, :n_outs[l]] for l in range(n_chain)]
    spk = [res[2 * n_chain + l, :n_outs[l]] for l in range(n_chain)]

    # spikes used for the history update (torch: target overrides the out layer's draw)
    upd = list(spk)
    if target is not None:
        upd[-1] = target.astype(jnp.float32)

    # spiking_history shift + append (once per forward; tiny)
    new_chain = []
    for l, lyr in enumerate(chain):
        Th, keep = plan['Ths'][l], plan['keeps'][l]
        new_hist = jnp.concatenate([lyr['hist'][:, Th - keep:], upd[l][:, None]], axis=1)
        new_chain.append(dict(lyr, hist=new_hist))

    def rows(pre_val, fin_val):
        if n_samples == 1:
            return fin_val[None]
        reps = (n_samples - 1,) + (1,) * pre_val.ndim
        return jnp.concatenate([jnp.tile(pre_val[None], reps), fin_val[None]], axis=0)

    net_probas = rows(pre[-1], fin[-1])
    net_outputs = rows(chain[-1]['hist'][:, -1], upd[-1])

    if n_hidden > 0:
        probas_hidden = rows(jnp.stack(pre[:n_hidden]), jnp.stack(fin[:n_hidden]))
        outputs_hidden = rows(jnp.stack([lyr['hist'][:, -1] for lyr in chain[:n_hidden]]),
                              jnp.stack(spk[:n_hidden]))
    else:
        probas_hidden = None
        outputs_hidden = None

    return (net_probas, net_outputs, probas_hidden, outputs_hidden,
            new_chain[:n_hidden], new_chain[-1])


# ----------------------------------------------------------------------------------
# Plain-JAX reference (direct transcription of the torch layer math) for validation.
# ----------------------------------------------------------------------------------
def _ref_layer_step(lyr, input_history, u_row, target=None, no_update=False,
                    forced_spike=None):
    T = input_history.shape[-1]
    ff_tr = jnp.matmul(input_history[:, ::-1], lyr['ff_filter'][:T], precision=_HIGHEST)
    pot_ff = jnp.sum(lyr['ff_w'] * ff_tr[None, :, :], axis=(-1, -2))
    hist = lyr['hist']
    Th = hist.shape[-1]
    fb_tr = jnp.matmul(hist[:, ::-1], lyr['fb_filter'][:Th], precision=_HIGHEST)
    pot_fb = jnp.sum(lyr['fb_w'] * fb_tr, axis=-1)
    proba = jax.nn.sigmoid(pot_ff + pot_fb + lyr['bias'])
    if target is not None:
        outputs = target.astype(jnp.float32)
    elif forced_spike is not None:
        outputs = forced_spike
    else:
        outputs = (u_row[:proba.shape[0]] < proba).astype(jnp.float32)
    if not no_update:
        mem = max(lyr['tau_ff'], lyr['tau_fb'])
        keep = Th if mem <= 1 else min(Th, mem - 1)
        lyr = dict(lyr, hist=jnp.concatenate([hist[:, Th - keep:], outputs[:, None]], axis=1))
    return proba, lyr['hist'][:, -1], lyr


def _ref_layered_forward(hidden_layers, out_layer, inputs_history, uniforms,
                         target=None, n_samples=1, forced_final_spikes=None):
    hidden_layers = list(hidden_layers)
    n_hidden = len(hidden_layers)
    net_p, net_o, ph, oh = [], [], [], []
    for i in range(n_samples):
        no_update = (n_samples - 1 - i) != 0

        def forced(idx):
            if no_update or forced_final_spikes is None:
                return None
            return forced_final_spikes[idx]

        if n_hidden > 0:
            ph_t, oh_t = [], []
            p, o, hidden_layers[0] = _ref_layer_step(hidden_layers[0], inputs_history,
                                                     uniforms[0], None, no_update, forced(0))
            ph_t.append(p); oh_t.append(o)
            for j in range(1, n_hidden):
                p, o, hidden_layers[j] = _ref_layer_step(hidden_layers[j],
                                                         hidden_layers[j - 1]['hist'],
                                                         uniforms[j], None, no_update,
                                                         forced(j))
                ph_t.append(p); oh_t.append(o)
            ph.append(jnp.stack(ph_t)); oh.append(jnp.stack(oh_t))
            p_out, o_out, out_layer = _ref_layer_step(out_layer, hidden_layers[-1]['hist'],
                                                      uniforms[n_hidden], target, no_update,
                                                      forced(n_hidden))
        else:
            p_out, o_out, out_layer = _ref_layer_step(out_layer, inputs_history, uniforms[0],
                                                      target, no_update, forced(0))
        net_p.append(p_out); net_o.append(o_out)
    ph = jnp.stack(ph) if n_hidden > 0 else None
    oh = jnp.stack(oh) if n_hidden > 0 else None
    return jnp.stack(net_p), jnp.stack(net_o), ph, oh, hidden_layers, out_layer


# ----------------------------------------------------------------------------------
if __name__ == "__main__":
    key = jax.random.PRNGKey(0)

    # LayeredSNN(n_input_neurons=16, n_neurons_per_layer=[32, 32], n_output_neurons=8,
    #            n_basis_feedforward=[8], n_basis_feedback=[1], tau_ff=[10], tau_fb=[10],
    #            mu=[0.5]) on a length-8 binary input spike history, n_samples=2.
    n_input, hidden_sizes, n_output = 16, [32, 32], 8
    nb_ff, nb_fb, tau_ff, tau_fb, mu = 8, 1, 10, 10, 0.5
    T = 8
    n_samples = 2
    n_hidden = len(hidden_sizes)

    Nhid = [n_input] + hidden_sizes
    keys = jax.random.split(key, n_hidden + 3)
    hidden_layers = [init_snn_layer(keys[i], Nhid[i], Nhid[i + 1], nb_ff, nb_fb,
                                    tau_ff, tau_fb, mu) for i in range(n_hidden)]
    out_layer = init_snn_layer(keys[n_hidden], Nhid[-1], n_output, nb_ff, nb_fb,
                               tau_ff, tau_fb, mu)

    inputs_history = (jax.random.uniform(keys[n_hidden + 1], (n_input, T)) < 0.3
                      ).astype(jnp.float32)

    # One-time prep (re-run only when parameters or history widths change).
    plan = prepare_layered_snn(hidden_layers, out_layer, T)

    # Uniforms for the final sample's Bernoulli draws (torch.bernoulli equivalent).
    u = jax.random.uniform(keys[n_hidden + 2], (plan['n_chain'], plan['max_n_out']),
                           dtype=jnp.float32)

    (net_probas, net_outputs, probas_hidden, outputs_hidden,
     new_hidden, new_out) = layered_snn_forward(plan, hidden_layers, out_layer,
                                                inputs_history, u,
                                                target=None, n_samples=n_samples)
    jax.block_until_ready((net_probas, net_outputs, probas_hidden, outputs_hidden,
                           [l['hist'] for l in new_hidden], new_out['hist']))

    # --- shape / range checks ---
    assert net_probas.shape == (n_samples, n_output)
    assert net_outputs.shape == (n_samples, n_output)
    assert probas_hidden.shape == (n_samples, n_hidden, hidden_sizes[0])
    assert outputs_hidden.shape == (n_samples, n_hidden, hidden_sizes[0])
    assert bool(jnp.all((net_probas >= 0.0) & (net_probas <= 1.0)))
    assert bool(jnp.all((net_outputs == 0.0) | (net_outputs == 1.0)))
    assert bool(jnp.all((outputs_hidden == 0.0) | (outputs_hidden == 1.0)))
    assert new_hidden[0]['hist'].shape == (hidden_sizes[0], 3)   # history grew 2 -> 3
    assert new_out['hist'].shape == (n_output, 3)

    # --- numerical check vs. the plain-JAX transcription of the torch layer math ---
    kernel_final_spikes = ([outputs_hidden[-1, j] for j in range(n_hidden)]
                           + [net_outputs[-1]])
    (ref_np, ref_no, ref_ph, ref_oh,
     ref_hidden, ref_out) = _ref_layered_forward(hidden_layers, out_layer, inputs_history,
                                                 u, target=None, n_samples=n_samples,
                                                 forced_final_spikes=kernel_final_spikes)
    assert bool(jnp.allclose(net_probas, ref_np, rtol=2e-3, atol=2e-3))
    assert bool(jnp.allclose(probas_hidden, ref_ph, rtol=2e-3, atol=2e-3))
    assert bool(jnp.array_equal(net_outputs, ref_no))
    assert bool(jnp.array_equal(outputs_hidden, ref_oh))
    for j in range(n_hidden):
        assert bool(jnp.array_equal(new_hidden[j]['hist'], ref_hidden[j]['hist']))
    assert bool(jnp.array_equal(new_out['hist'], ref_out['hist']))

    # Kernel Bernoulli draws are consistent with its own probabilities + uniforms.
    for j in range(n_hidden):
        expect = (u[j, :hidden_sizes[j]] < probas_hidden[-1, j]).astype(jnp.float32)
        assert bool(jnp.array_equal(outputs_hidden[-1, j], expect))
    expect = (u[n_hidden, :n_output] < net_probas[-1]).astype(jnp.float32)
    assert bool(jnp.array_equal(net_outputs[-1], expect))

    print("KERNEL_OK")
</pallas_src>

<mosaic_0001>
module attributes {stable_mosaic.version = 11 : i64} {
  func.func @kernel(%arg0: i32, %arg1: memref<1x128xf32, #tpu.memory_space<vmem>>, %arg2: memref<1x64xf32, #tpu.memory_space<vmem>>, %arg3: memref<1x64xf32, #tpu.memory_space<vmem>>, %arg4: memref<1x16xf32, #tpu.memory_space<vmem>>, %arg5: memref<128x32xf32, #tpu.memory_space<vmem>>, %arg6: memref<64x32xf32, #tpu.memory_space<vmem>>, %arg7: memref<64x8xf32, #tpu.memory_space<vmem>>, %arg8: memref<64x32xf32, #tpu.memory_space<vmem>>, %arg9: memref<64x32xf32, #tpu.memory_space<vmem>>, %arg10: memref<16x8xf32, #tpu.memory_space<vmem>>, %arg11: memref<1x32xf32, #tpu.memory_space<vmem>>, %arg12: memref<1x32xf32, #tpu.memory_space<vmem>>, %arg13: memref<1x8xf32, #tpu.memory_space<vmem>>, %arg14: memref<64x32xf32, #tpu.memory_space<vmem>>, %arg15: memref<64x8xf32, #tpu.memory_space<vmem>>, %arg16: memref<32x32xf32, #tpu.memory_space<vmem>>, %arg17: memref<32x8xf32, #tpu.memory_space<vmem>>, %arg18: memref<3x32xf32, #tpu.memory_space<vmem>>, %arg19: memref<9x32xf32, #tpu.memory_space<vmem>>) attributes {dimension_semantics = [#tpu.dimension_semantics<arbitrary>], iteration_bounds = array<i64: 1>, scalar_prefetch = 0 : i64, scratch_operands = 0 : i64, tpu.core_type = #tpu.core_type<tc>, window_params = [{pipeline_mode = #tpu.pipeline_mode<synchronous>, transform_indices = @transform_0, window_bounds = array<i64: 1, 128>}, {pipeline_mode = #tpu.pipeline_mode<synchronous>, transform_indices = @transform_1, window_bounds = array<i64: 1, 64>}, {pipeline_mode = #tpu.pipeline_mode<synchronous>, transform_indices = @transform_2, window_bounds = array<i64: 1, 64>}, {pipeline_mode = #tpu.pipeline_mode<synchronous>, transform_indices = @transform_3, window_bounds = array<i64: 1, 16>}, {pipeline_mode = #tpu.pipeline_mode<synchronous>, transform_indices = @transform_4, window_bounds = array<i64: 128, 32>}, {pipeline_mode = #tpu.pipeline_mode<synchronous>, transform_indices = @transform_5, window_bounds = array<i64: 64, 32>}, {pipeline_mode = #tpu.pipeline_mode<synchronous>, transform_indices = @transform_6, window_bounds = array<i64: 64, 8>}, {pipeline_mode = #tpu.pipeline_mode<synchronous>, transform_indices = @transform_7, window_bounds = array<i64: 64, 32>}, {pipeline_mode = #tpu.pipeline_mode<synchronous>, transform_indices = @transform_8, window_bounds = array<i64: 64, 32>}, {pipeline_mode = #tpu.pipeline_mode<synchronous>, transform_indices = @transform_9, window_bounds = array<i64: 16, 8>}, {pipeline_mode = #tpu.pipeline_mode<synchronous>, transform_indices = @transform_10, window_bounds = array<i64: 1, 32>}, {pipeline_mode = #tpu.pipeline_mode<synchronous>, transform_indices = @transform_11, window_bounds = array<i64: 1, 32>}, {pipeline_mode = #tpu.pipeline_mode<synchronous>, transform_indices = @transform_12, window_bounds = array<i64: 1, 8>}, {pipeline_mode = #tpu.pipeline_mode<synchronous>, transform_indices = @transform_13, window_bounds = array<i64: 64, 32>}, {pipeline_mode = #tpu.pipeline_mode<synchronous>, transform_indices = @transform_14, window_bounds = array<i64: 64, 8>}, {pipeline_mode = #tpu.pipeline_mode<synchronous>, transform_indices = @transform_15, window_bounds = array<i64: 32, 32>}, {pipeline_mode = #tpu.pipeline_mode<synchronous>, transform_indices = @transform_16, window_bounds = array<i64: 32, 8>}, {pipeline_mode = #tpu.pipeline_mode<synchronous>, transform_indices = @transform_17, window_bounds = array<i64: 3, 32>}, {pipeline_mode = #tpu.pipeline_mode<synchronous>, transform_indices = @transform_18, window_bounds = array<i64: 9, 32>}]} {
    %cst = arith.constant 0.000000e+00 : f32
    %0 = vector.broadcast %cst : f32 to vector<9x32xf32>
    %c0 = arith.constant 0 : index
    %c0_0 = arith.constant 0 : index
    %1 = vector.load %arg19[%c0, %c0_0] : memref<9x32xf32, #tpu.memory_space<vmem>>, vector<9x32xf32>
    tpu.vector_store %arg19[%c0, %c0_0], %0 {strides = array<i32>} : memref<9x32xf32, #tpu.memory_space<vmem>>, vector<9x32xf32>,
    %c0_1 = arith.constant 0 : index
    %c0_2 = arith.constant 0 : index
    %2 = vector.load %arg1[%c0_1, %c0_2] : memref<1x128xf32, #tpu.memory_space<vmem>>, vector<1x128xf32>
    %c0_3 = arith.constant 0 : index
    %c0_4 = arith.constant 0 : index
    %3 = vector.load %arg2[%c0_3, %c0_4] : memref<1x64xf32, #tpu.memory_space<vmem>>, vector<1x64xf32>
    %c0_5 = arith.constant 0 : index
    %c0_6 = arith.constant 0 : index
    %4 = vector.load %arg3[%c0_5, %c0_6] : memref<1x64xf32, #tpu.memory_space<vmem>>, vector<1x64xf32>
    %c0_7 = arith.constant 0 : index
    %c0_8 = arith.constant 0 : index
    %5 = vector.load %arg4[%c0_7, %c0_8] : memref<1x16xf32, #tpu.memory_space<vmem>>, vector<1x16xf32>
    %c0_9 = arith.constant 0 : index
    %c0_10 = arith.constant 0 : index
    %6 = vector.load %arg8[%c0_9, %c0_10] : memref<64x32xf32, #tpu.memory_space<vmem>>, vector<64x32xf32>
    %cst_11 = arith.constant dense<0.000000e+00> : vector<1x32xf32>
    %7 = tpu.matmul %3, %6, %cst_11 {dimension_numbers = #tpu.dot_dimension_numbers<[1], [0], [0], [1], [0, 0, 1, 1], [], []>} : vector<1x64xf32>, vector<64x32xf32>, vector<1x32xf32> -> vector<1x32xf32>
    %c0_12 = arith.constant 0 : index
    %c0_13 = arith.constant 0 : index
    %8 = vector.load %arg11[%c0_12, %c0_13] : memref<1x32xf32, #tpu.memory_space<vmem>>, vector<1x32xf32>
    %9 = arith.addf %7, %8 : vector<1x32xf32>
    %c0_14 = arith.constant 0 : index
    %c0_15 = arith.constant 0 : index
    %10 = vector.load %arg5[%c0_14, %c0_15] : memref<128x32xf32, #tpu.memory_space<vmem>>, vector<128x32xf32>
    %cst_16 = arith.constant dense<0.000000e+00> : vector<1x32xf32>
    %11 = tpu.matmul %2, %10, %cst_16 {dimension_numbers = #tpu.dot_dimension_numbers<[1], [0], [0], [1], [0, 0, 1, 1], [], []>} : vector<1x128xf32>, vector<128x32xf32>, vector<1x32xf32> -> vector<1x32xf32>
    %12 = arith.addf %11, %9 : vector<1x32xf32>
    %13 = arith.negf %12 : vector<1x32xf32>
    %14 = math.exp %13 : vector<1x32xf32>
    %cst_17 = arith.constant 1.000000e+00 : f32
    %15 = vector.broadcast %cst_17 : f32 to vector<1x32xf32>
    %16 = arith.addf %15, %14 : vector<1x32xf32>
    %17 = arith.divf %15, %16 : vector<1x32xf32>
    %c0_18 = arith.constant 0 : index
    %c0_19 = arith.constant 0 : index
    %18 = vector.load %arg19[%c0_18, %c0_19] : memref<9x32xf32, #tpu.memory_space<vmem>>, vector<1x32xf32>
    tpu.vector_store %arg19[%c0_18, %c0_19], %17 {strides = array<i32>} : memref<9x32xf32, #tpu.memory_space<vmem>>, vector<1x32xf32>,
    %c0_20 = arith.constant 0 : index
    %c0_21 = arith.constant 0 : index
    %19 = vector.load %arg9[%c0_20, %c0_21] : memref<64x32xf32, #tpu.memory_space<vmem>>, vector<64x32xf32>
    %cst_22 = arith.constant dense<0.000000e+00> : vector<1x32xf32>
    %20 = tpu.matmul %4, %19, %cst_22 {dimension_numbers = #tpu.dot_dimension_numbers<[1], [0], [0], [1], [0, 0, 1, 1], [], []>} : vector<1x64xf32>, vector<64x32xf32>, vector<1x32xf32> -> vector<1x32xf32>
    %c0_23 = arith.constant 0 : index
    %c0_24 = arith.constant 0 : index
    %21 = vector.load %arg12[%c0_23, %c0_24] : memref<1x32xf32, #tpu.memory_space<vmem>>, vector<1x32xf32>
    %22 = arith.addf %20, %21 : vector<1x32xf32>
    %c0_25 = arith.constant 0 : index
    %c0_26 = arith.constant 0 : index
    %23 = vector.load %arg6[%c0_25, %c0_26] : memref<64x32xf32, #tpu.memory_space<vmem>>, vector<64x32xf32>
    %cst_27 = arith.constant dense<0.000000e+00> : vector<1x32xf32>
    %24 = tpu.matmul %3, %23, %cst_27 {dimension_numbers = #tpu.dot_dimension_numbers<[1], [0], [0], [1], [0, 0, 1, 1], [], []>} : vector<1x64xf32>, vector<64x32xf32>, vector<1x32xf32> -> vector<1x32xf32>
    %25 = arith.addf %24, %22 : vector<1x32xf32>
    %26 = arith.negf %25 : vector<1x32xf32>
    %27 = math.exp %26 : vector<1x32xf32>
    %cst_28 = arith.constant 1.000000e+00 : f32
    %28 = vector.broadcast %cst_28 : f32 to vector<1x32xf32>
    %29 = arith.addf %28, %27 : vector<1x32xf32>
    %30 = arith.divf %28, %29 : vector<1x32xf32>
    %c1 = arith.constant 1 : index
    %c0_29 = arith.constant 0 : index
    %31 = vector.load %arg19[%c1, %c0_29] : memref<9x32xf32, #tpu.memory_space<vmem>>, vector<1x32xf32>
    tpu.vector_store %arg19[%c1, %c0_29], %30 {strides = array<i32>} : memref<9x32xf32, #tpu.memory_space<vmem>>, vector<1x32xf32>,
    %c0_30 = arith.constant 0 : index
    %c0_31 = arith.constant 0 : index
    %32 = vector.load %arg10[%c0_30, %c0_31] : memref<16x8xf32, #tpu.memory_space<vmem>>, vector<16x8xf32>
    %cst_32 = arith.constant dense<0.000000e+00> : vector<1x8xf32>
    %33 = tpu.matmul %5, %32, %cst_32 {dimension_numbers = #tpu.dot_dimension_numbers<[1], [0], [0], [1], [0, 0, 1, 1], [], []>} : vector<1x16xf32>, vector<16x8xf32>, vector<1x8xf32> -> vector<1x8xf32>
    %c0_33 = arith.constant 0 : index
    %c0_34 = arith.constant 0 : index
    %34 = vector.load %arg13[%c0_33, %c0_34] : memref<1x8xf32, #tpu.memory_space<vmem>>, vector<1x8xf32>
    %35 = arith.addf %33, %34 : vector<1x8xf32>
    %c0_35 = arith.constant 0 : index
    %c0_36 = arith.constant 0 : index
    %36 = vector.load %arg7[%c0_35, %c0_36] : memref<64x8xf32, #tpu.memory_space<vmem>>, vector<64x8xf32>
    %cst_37 = arith.constant dense<0.000000e+00> : vector<1x8xf32>
    %37 = tpu.matmul %4, %36, %cst_37 {dimension_numbers = #tpu.dot_dimension_numbers<[1], [0], [0], [1], [0, 0, 1, 1], [], []>} : vector<1x64xf32>, vector<64x8xf32>, vector<1x8xf32> -> vector<1x8xf32>
    %38 = arith.addf %37, %35 : vector<1x8xf32>
    %39 = arith.negf %38 : vector<1x8xf32>
    %40 = math.exp %39 : vector<1x8xf32>
    %cst_38 = arith.constant 1.000000e+00 : f32
    %41 = vector.broadcast %cst_38 : f32 to vector<1x8xf32>
    %42 = arith.addf %41, %40 : vector<1x8xf32>
    %43 = arith.divf %41, %42 : vector<1x8xf32>
    %c2 = arith.constant 2 : index
    %c0_39 = arith.constant 0 : index
    %44 = vector.load %arg19[%c2, %c0_39] : memref<9x32xf32, #tpu.memory_space<vmem>>, vector<1x8xf32>
    tpu.vector_store %arg19[%c2, %c0_39], %43 {strides = array<i32>} : memref<9x32xf32, #tpu.memory_space<vmem>>, vector<1x8xf32>,
    %c3 = arith.constant 3 : index
    %c0_40 = arith.constant 0 : index
    %45 = vector.load %arg19[%c3, %c0_40] : memref<9x32xf32, #tpu.memory_space<vmem>>, vector<1x32xf32>
    tpu.vector_store %arg19[%c3, %c0_40], %17 {strides = array<i32>} : memref<9x32xf32, #tpu.memory_space<vmem>>, vector<1x32xf32>,
    %c0_41 = arith.constant 0 : index
    %c0_42 = arith.constant 0 : index
    %46 = vector.load %arg18[%c0_41, %c0_42] : memref<3x32xf32, #tpu.memory_space<vmem>>, vector<1x32xf32>
    %47 = arith.cmpf olt, %46, %17 : vector<1x32xf32>
    %48 = arith.extui %47 : vector<1x32xi1> to vector<1x32xi32>
    %49 = arith.sitofp %48 : vector<1x32xi32> to vector<1x32xf32>
    %c6 = arith.constant 6 : index
    %c0_43 = arith.constant 0 : index
    %50 = vector.load %arg19[%c6, %c0_43] : memref<9x32xf32, #tpu.memory_space<vmem>>, vector<1x32xf32>
    tpu.vector_store %arg19[%c6, %c0_43], %49 {strides = array<i32>} : memref<9x32xf32, #tpu.memory_space<vmem>>, vector<1x32xf32>,
    %c0_44 = arith.constant 0 : index
    %c0_45 = arith.constant 0 : index
    %51 = vector.load %arg14[%c0_44, %c0_45] : memref<64x32xf32, #tpu.memory_space<vmem>>, vector<64x32xf32>
    %cst_46 = arith.constant dense<0.000000e+00> : vector<1x32xf32>
    %52 = tpu.matmul %3, %51, %cst_46 {dimension_numbers = #tpu.dot_dimension_numbers<[1], [0], [0], [1], [0, 0, 1, 1], [], []>} : vector<1x64xf32>, vector<64x32xf32>, vector<1x32xf32> -> vector<1x32xf32>
    %c0_47 = arith.constant 0 : index
    %c0_48 = arith.constant 0 : index
    %53 = vector.load %arg16[%c0_47, %c0_48] : memref<32x32xf32, #tpu.memory_space<vmem>>, vector<32x32xf32>
    %cst_49 = arith.constant dense<0.000000e+00> : vector<1x32xf32>
    %54 = tpu.matmul %49, %53, %cst_49 {dimension_numbers = #tpu.dot_dimension_numbers<[1], [0], [0], [1], [0, 0, 1, 1], [], []>} : vector<1x32xf32>, vector<32x32xf32>, vector<1x32xf32> -> vector<1x32xf32>
    %55 = arith.addf %52, %54 : vector<1x32xf32>
    %56 = arith.addf %55, %22 : vector<1x32xf32>
    %57 = arith.negf %56 : vector<1x32xf32>
    %58 = math.exp %57 : vector<1x32xf32>
    %cst_50 = arith.constant 1.000000e+00 : f32
    %59 = vector.broadcast %cst_50 : f32 to vector<1x32xf32>
    %60 = arith.addf %59, %58 : vector<1x32xf32>
    %61 = arith.divf %59, %60 : vector<1x32xf32>
    %c4 = arith.constant 4 : index
    %c0_51 = arith.constant 0 : index
    %62 = vector.load %arg19[%c4, %c0_51] : memref<9x32xf32, #tpu.memory_space<vmem>>, vector<1x32xf32>
    tpu.vector_store %arg19[%c4, %c0_51], %61 {strides = array<i32>} : memref<9x32xf32, #tpu.memory_space<vmem>>, vector<1x32xf32>,
    %c1_52 = arith.constant 1 : index
    %c0_53 = arith.constant 0 : index
    %63 = vector.load %arg18[%c1_52, %c0_53] : memref<3x32xf32, #tpu.memory_space<vmem>>, vector<1x32xf32>
    %64 = arith.cmpf olt, %63, %61 : vector<1x32xf32>
    %65 = arith.extui %64 : vector<1x32xi1> to vector<1x32xi32>
    %66 = arith.sitofp %65 : vector<1x32xi32> to vector<1x32xf32>
    %c7 = arith.constant 7 : index
    %c0_54 = arith.constant 0 : index
    %67 = vector.load %arg19[%c7, %c0_54] : memref<9x32xf32, #tpu.memory_space<vmem>>, vector<1x32xf32>
    tpu.vector_store %arg19[%c7, %c0_54], %66 {strides = array<i32>} : memref<9x32xf32, #tpu.memory_space<vmem>>, vector<1x32xf32>,
    %c0_55 = arith.constant 0 : index
    %c0_56 = arith.constant 0 : index
    %68 = vector.load %arg15[%c0_55, %c0_56] : memref<64x8xf32, #tpu.memory_space<vmem>>, vector<64x8xf32>
    %cst_57 = arith.constant dense<0.000000e+00> : vector<1x8xf32>
    %69 = tpu.matmul %4, %68, %cst_57 {dimension_numbers = #tpu.dot_dimension_numbers<[1], [0], [0], [1], [0, 0, 1, 1], [], []>} : vector<1x64xf32>, vector<64x8xf32>, vector<1x8xf32> -> vector<1x8xf32>
    %c0_58 = arith.constant 0 : index
    %c0_59 = arith.constant 0 : index
    %70 = vector.load %arg17[%c0_58, %c0_59] : memref<32x8xf32, #tpu.memory_space<vmem>>, vector<32x8xf32>
    %cst_60 = arith.constant dense<0.000000e+00> : vector<1x8xf32>
    %71 = tpu.matmul %66, %70, %cst_60 {dimension_numbers = #tpu.dot_dimension_numbers<[1], [0], [0], [1], [0, 0, 1, 1], [], []>} : vector<1x32xf32>, vector<32x8xf32>, vector<1x8xf32> -> vector<1x8xf32>
    %72 = arith.addf %69, %71 : vector<1x8xf32>
    %73 = arith.addf %72, %35 : vector<1x8xf32>
    %74 = arith.negf %73 : vector<1x8xf32>
    %75 = math.exp %74 : vector<1x8xf32>
    %cst_61 = arith.constant 1.000000e+00 : f32
    %76 = vector.broadcast %cst_61 : f32 to vector<1x8xf32>
    %77 = arith.addf %76, %75 : vector<1x8xf32>
    %78 = arith.divf %76, %77 : vector<1x8xf32>
    %c5 = arith.constant 5 : index
    %c0_62 = arith.constant 0 : index
    %79 = vector.load %arg19[%c5, %c0_62] : memref<9x32xf32, #tpu.memory_space<vmem>>, vector<1x8xf32>
    tpu.vector_store %arg19[%c5, %c0_62], %78 {strides = array<i32>} : memref<9x32xf32, #tpu.memory_space<vmem>>, vector<1x8xf32>,
    %c2_63 = arith.constant 2 : index
    %c0_64 = arith.constant 0 : index
    %80 = vector.load %arg18[%c2_63, %c0_64] : memref<3x32xf32, #tpu.memory_space<vmem>>, vector<1x8xf32>
    %81 = arith.cmpf olt, %80, %78 : vector<1x8xf32>
    %82 = arith.extui %81 : vector<1x8xi1> to vector<1x8xi32>
    %83 = arith.sitofp %82 : vector<1x8xi32> to vector<1x8xf32>
    %c8 = arith.constant 8 : index
    %c0_65 = arith.constant 0 : index
    %84 = vector.load %arg19[%c8, %c0_65] : memref<9x32xf32, #tpu.memory_space<vmem>>, vector<1x8xf32>
    tpu.vector_store %arg19[%c8, %c0_65], %83 {strides = array<i32>} : memref<9x32xf32, #tpu.memory_space<vmem>>, vector<1x8xf32>,
    return
  }
  func.func @transform_0(%arg0: i32) -> (i32, i32) {
    %c0_i32 = arith.constant 0 : i32
    %c0_i32_0 = arith.constant 0 : i32
    %c0_i32_1 = arith.constant 0 : i32
    return %c0_i32, %c0_i32_0 : i32, i32
  }
  func.func @transform_1(%arg0: i32) -> (i32, i32) {
    %c0_i32 = arith.constant 0 : i32
    %c0_i32_0 = arith.constant 0 : i32
    %c0_i32_1 = arith.constant 0 : i32
    return %c0_i32, %c0_i32_0 : i32, i32
  }
  func.func @transform_2(%arg0: i32) -> (i32, i32) {
    %c0_i32 = arith.constant 0 : i32
    %c0_i32_0 = arith.constant 0 : i32
    %c0_i32_1 = arith.constant 0 : i32
    return %c0_i32, %c0_i32_0 : i32, i32
  }
  func.func @transform_3(%arg0: i32) -> (i32, i32) {
    %c0_i32 = arith.constant 0 : i32
    %c0_i32_0 = arith.constant 0 : i32
    %c0_i32_1 = arith.constant 0 : i32
    return %c0_i32, %c0_i32_0 : i32, i32
  }
  func.func @transform_4(%arg0: i32) -> (i32, i32) {
    %c0_i32 = arith.constant 0 : i32
    %c0_i32_0 = arith.constant 0 : i32
    %c0_i32_1 = arith.constant 0 : i32
    return %c0_i32, %c0_i32_0 : i32, i32
  }
  func.func @transform_5(%arg0: i32) -> (i32, i32) {
    %c0_i32 = arith.constant 0 : i32
    %c0_i32_0 = arith.constant 0 : i32
    %c0_i32_1 = arith.constant 0 : i32
    return %c0_i32, %c0_i32_0 : i32, i32
  }
  func.func @transform_6(%arg0: i32) -> (i32, i32) {
    %c0_i32 = arith.constant 0 : i32
    %c0_i32_0 = arith.constant 0 : i32
    %c0_i32_1 = arith.constant 0 : i32
    return %c0_i32, %c0_i32_0 : i32, i32
  }
  func.func @transform_7(%arg0: i32) -> (i32, i32) {
    %c0_i32 = arith.constant 0 : i32
    %c0_i32_0 = arith.constant 0 : i32
    %c0_i32_1 = arith.constant 0 : i32
    return %c0_i32, %c0_i32_0 : i32, i32
  }
  func.func @transform_8(%arg0: i32) -> (i32, i32) {
    %c0_i32 = arith.constant 0 : i32
    %c0_i32_0 = arith.constant 0 : i32
    %c0_i32_1 = arith.constant 0 : i32
    return %c0_i32, %c0_i32_0 : i32, i32
  }
  func.func @transform_9(%arg0: i32) -> (i32, i32) {
    %c0_i32 = arith.constant 0 : i32
    %c0_i32_0 = arith.constant 0 : i32
    %c0_i32_1 = arith.constant 0 : i32
    return %c0_i32, %c0_i32_0 : i32, i32
  }
  func.func @transform_10(%arg0: i32) -> (i32, i32) {
    %c0_i32 = arith.constant 0 : i32
    %c0_i32_0 = arith.constant 0 : i32
    %c0_i32_1 = arith.constant 0 : i32
    return %c0_i32, %c0_i32_0 : i32, i32
  }
  func.func @transform_11(%arg0: i32) -> (i32, i32) {
    %c0_i32 = arith.constant 0 : i32
    %c0_i32_0 = arith.constant 0 : i32
    %c0_i32_1 = arith.constant 0 : i32
    return %c0_i32, %c0_i32_0 : i32, i32
  }
  func.func @transform_12(%arg0: i32) -> (i32, i32) {
    %c0_i32 = arith.constant 0 : i32
    %c0_i32_0 = arith.constant 0 : i32
    %c0_i32_1 = arith.constant 0 : i32
    return %c0_i32, %c0_i32_0 : i32, i32
  }
  func.func @transform_13(%arg0: i32) -> (i32, i32) {
    %c0_i32 = arith.constant 0 : i32
    %c0_i32_0 = arith.constant 0 : i32
    %c0_i32_1 = arith.constant 0 : i32
    return %c0_i32, %c0_i32_0 : i32, i32
  }
  func.func @transform_14(%arg0: i32) -> (i32, i32) {
    %c0_i32 = arith.constant 0 : i32
    %c0_i32_0 = arith.constant 0 : i32
    %c0_i32_1 = arith.constant 0 : i32
    return %c0_i32, %c0_i32_0 : i32, i32
  }
  func.func @transform_15(%arg0: i32) -> (i32, i32) {
    %c0_i32 = arith.constant 0 : i32
    %c0_i32_0 = arith.constant 0 : i32
    %c0_i32_1 = arith.constant 0 : i32
    return %c0_i32, %c0_i32_0 : i32, i32
  }
  func.func @transform_16(%arg0: i32) -> (i32, i32) {
    %c0_i32 = arith.constant 0 : i32
    %c0_i32_0 = arith.constant 0 : i32
    %c0_i32_1 = arith.constant 0 : i32
    return %c0_i32, %c0_i32_0 : i32, i32
  }
  func.func @transform_17(%arg0: i32) -> (i32, i32) {
    %c0_i32 = arith.constant 0 : i32
    %c0_i32_0 = arith.constant 0 : i32
    %c0_i32_1 = arith.constant 0 : i32
    return %c0_i32, %c0_i32_0 : i32, i32
  }
  func.func @transform_18(%arg0: i32) -> (i32, i32) {
    %c0_i32 = arith.constant 0 : i32
    %c0_i32_0 = arith.constant 0 : i32
    %c0_i32_1 = arith.constant 0 : i32
    return %c0_i32, %c0_i32_0 : i32, i32
  }
}

</mosaic_0001>

<bundles_post_ra>
// kernel: tpu_custom_call.1
= control target key start
LH: loop header
LB: loop body
LE: loop exit
PB: predicated region body
PF: predicated region fallthrough
CT: control target
= control target key end

     0   :  { %s1839_s0 = inlined_call_operand.vmem [shape: f32[1,128], index: 0, kind: input, shape index: {}]   ;;  %s1840_s1 = inlined_call_operand.vmem [shape: f32[1,64], index: 1, kind: input, shape index: {}]   ;;  %s1841_s2 = inlined_call_operand.vmem [shape: f32[1,64], index: 2, kind: input, shape index: {}]   ;;  %s1842_s3 = inlined_call_operand.vmem [shape: f32[1,16], index: 3, kind: input, shape index: {}]   ;;  %s1843_s4 = inlined_call_operand.vmem [shape: f32[128,32], index: 4, kind: input, shape index: {}]   ;;  %s1844_s5 = inlined_call_operand.vmem [shape: f32[64,32], index: 5, kind: input, shape index: {}]   ;;  %s1845_s6 = inlined_call_operand.vmem [shape: f32[64,8], index: 6, kind: input, shape index: {}]   ;;  %s1846_s7 = inlined_call_operand.vmem [shape: f32[64,32], index: 7, kind: input, shape index: {}]   ;;  %s1847_s8 = inlined_call_operand.vmem [shape: f32[64,32], index: 8, kind: input, shape index: {}]   ;;  %s1848_s9 = inlined_call_operand.vmem [shape: f32[16,8], index: 9, kind: input, shape index: {}]   ;;  %s1849_s10 = inlined_call_operand.vmem [shape: f32[1,32], index: 10, kind: input, shape index: {}]   ;;  %s1850_s11 = inlined_call_operand.vmem [shape: f32[1,32], index: 11, kind: input, shape index: {}]   ;;  %s1851_s12 = inlined_call_operand.vmem [shape: f32[1,8], index: 12, kind: input, shape index: {}]   ;;  %s1852_s13 = inlined_call_operand.vmem [shape: f32[64,32], index: 13, kind: input, shape index: {}]   ;;  %s1853_s14 = inlined_call_operand.vmem [shape: f32[64,8], index: 14, kind: input, shape index: {}]   ;;  %s1854_s15 = inlined_call_operand.vmem [shape: f32[32,32], index: 15, kind: input, shape index: {}]   ;;  %s1855_s16 = inlined_call_operand.vmem [shape: f32[32,8], index: 16, kind: input, shape index: {}]   ;;  %s1856_s17 = inlined_call_operand.vmem [shape: f32[3,32], index: 17, kind: input, shape index: {}]   ;;  %s1857_s18 = inlined_call_operand.hbm [shape: f32[9,32], index: 18, kind: output, shape index: {}]  }
   0x1   :  { %1858 = sst [smem:[#allocation5_spill]] %s1839_s0 }
   0x2   :  { %1859 = sst [smem:[#allocation6_spill]] %s1840_s1 }
   0x3   :  { %1860 = sst [smem:[#allocation7_spill]] %s1841_s2 }
   0x4   :  { %v68_v0 = vld [vmem:[%s1846_s7] sm:$0xff]  ;;  %v69_v1 = vld [vmem:[%s1846_s7 + $0x8] sm:$0xff]  ;;  %v70_v2 = vld [vmem:[%s1846_s7 + $0x10] sm:$0xff]  ;;  %v1375_v3 = vmov 0.0|0.0   ;;  %vm1376_vm0 = vmmov 0   ;;  %v1377_v6 = vmov 0.0  }
   0x5   :  { %1211 = vmatprep.subr.bf16.mxu0 %v1375_v3  ;;  %v1212_v4 = vpack.c.bf16 %v69_v1, %v68_v0  ;;  %v71_v5 = vld [vmem:[%s1846_s7 + $0x18] sm:$0xff]  ;;  %1049 = vmatprep.mubr.msk.f32.mxu0 %vm1376_vm0, %v1377_v6  ;;  %v72_v8 = vld [vmem:[%s1846_s7 + $0x20] sm:$0xff]  ;;  %v73_v9 = vld [vmem:[%s1846_s7 + $0x28] sm:$0xff]  ;;  %s1861_s30 = sld [smem:[#allocation6_spill]]  ;;  %vm77_vm1 = vcmask 523264  }
   0x6   :  { %1247 = vmatprep.subr.bf16.mxu1 %v1375_v3  ;;  %1103 = vmatprep.mubr.msk.f32.mxu1 %vm1376_vm0, %v1377_v6  ;;  %v1215_v7 = vpack.c.bf16 %v71_v5, %v70_v2  ;;  %v1218_v10 = vpack.c.bf16 %v73_v9, %v72_v8  ;;  %v74_v11 = vld [vmem:[%s1846_s7 + $0x30] sm:$0xff]  ;;  %v75_v12 = vld [vmem:[%s1846_s7 + $0x38] sm:$0xff]  ;;  %v244_v13 = vld [vmem:[%s1847_s8] sm:$0xff] }
   0x7   :  { %1213 = vmatpush3.bf16.msra.mxu0 %v1212_v4  ;;  %v245_v14 = vld [vmem:[%s1847_s8 + $0x8] sm:$0xff]  ;;  %v246_v15 = vld [vmem:[%s1847_s8 + $0x10] sm:$0xff]  ;;  %v247_v16 = vld [vmem:[%s1847_s8 + $0x18] sm:$0xff]  ;;  %v1221_v18 = vpack.c.bf16 %v75_v12, %v74_v11 }
   0x8   :  { %1214 = vmatprep.subr.bf16.mxu0 %v1375_v3  ;;  %v1248_v17 = vpack.c.bf16 %v245_v14, %v244_v13  ;;  %v151_v19 = vld [vmem:[%s1843_s4] sm:$0xff]  ;;  %v152_v20 = vld [vmem:[%s1843_s4 + $0x8] sm:$0xff]  ;;  %v1251_v21 = vpack.c.bf16 %v247_v16, %v246_v15  ;;  %v153_v26 = vld [vmem:[%s1843_s4 + $0x10] sm:$0xff] }
   0x9   :  { %v248_v22 = vld [vmem:[%s1847_s8 + $0x20] sm:$0xff]  ;;  %v249_v23 = vld [vmem:[%s1847_s8 + $0x28] sm:$0xff]  ;;  %v1224_v25 = vpack.c.bf16 %v152_v20, %v151_v19  ;;  %v154_v27 = vld [vmem:[%s1843_s4 + $0x18] sm:$0xff] }
   0xa   :  { %1249 = vmatpush3.bf16.msra.mxu1 %v1248_v17  ;;  %v1254_v28 = vpack.c.bf16 %v249_v23, %v248_v22  ;;  %v250_v29 = vld [vmem:[%s1847_s8 + $0x30] sm:$0xff]  ;;  %v251_v30 = vld [vmem:[%s1847_s8 + $0x38] sm:$0xff] }
   0xb   :  { %1216 = vmatpush3.bf16.msra.mxu0 %v1215_v7  ;;  %1250 = vmatprep.subr.bf16.mxu1 %v1375_v3  ;;  %v1537_v24 = vld [vmem:[%s1861_s30] sm:$0x1] }
   0xc   :  { %1217 = vmatprep.subr.bf16.mxu0 %v1375_v3 }
   0xe   :  { %1252 = vmatpush3.bf16.msra.mxu1 %v1251_v21 }
   0xf   :  { %1219 = vmatpush3.bf16.msra.mxu0 %v1218_v10  ;;  %1253 = vmatprep.subr.bf16.mxu1 %v1375_v3 }
  0x10   :  { %1220 = vmatprep.subr.bf16.mxu0 %v1375_v3 }
  0x13   :  { %1222 = vmatpush3.bf16.msra.mxu0 %v1221_v18 }
  0x14   :  { %1223 = vmatprep.subr.bf16.mxu0 %v1375_v3 }
  0x15   :  { %23 = vsyncpa [#allocation3], 0  ;;  %v1227_v31 = vpack.c.bf16 %v154_v27, %v153_v26  ;;  %v155_v32 = vld [vmem:[%s1843_s4 + $0x20] sm:$0xff]  ;;  %v156_v33 = vld [vmem:[%s1843_s4 + $0x28] sm:$0xff]  ;;  %1255 = vmatpush3.bf16.msra.mxu1 %v1254_v28  ;;  %v1257_v34 = vpack.c.bf16 %v251_v30, %v250_v29  ;;  %s1862_s7 = sld [smem:[#allocation7_spill]]  ;;  %vm414_vm2 = vcmask 130048  }
  0x16   :  { %1050 = vmatmul.mubr.msk.f32.vlgmr.msra.gmra.mrb[0].mxu0 %vm77_vm1, %v1537_v24  ;;  %1256 = vmatprep.subr.bf16.mxu1 %v1375_v3  ;;  %v326_v35 = vld [vmem:[%s1844_s5] sm:$0xff]  ;;  %v327_v36 = vld [vmem:[%s1844_s5 + $0x8] sm:$0xff]  ;;  %v1230_v37 = vpack.c.bf16 %v156_v33, %v155_v32  ;;  %v157_v38 = vld [vmem:[%s1843_s4 + $0x30] sm:$0xff]  ;;  %s1863_s27 = sld [smem:[#allocation5_spill]]  ;;  %vm60_vm3 = vcmask 261120   ;;  %vm62_vm4 = vcmask 253952  }
  0x17   :  { %1225 = vmatpush3.bf16.msra.mxu0 %v1224_v25  ;;  %1084 = vmatprep.mubr.msk.f32.mxu0 %vm1376_vm0, %v1377_v6  ;;  %v158_v39 = vld [vmem:[%s1843_s4 + $0x38] sm:$0xff]  ;;  %v1260_v41 = vpack.c.bf16 %v327_v36, %v326_v35  ;;  %v328_v42 = vld [vmem:[%s1844_s5 + $0x10] sm:$0xff]  ;;  %v159_v45 = vld [vmem:[%s1843_s4 + $0x40] sm:$0xff]  ;;  %61 = vst.msk [vmem:[#allocation2] sm:$0xff] %vm60_vm3, %v1377_v6  ;;  %vm572_vm6 = vcmask 57344  }
  0x18   :  { %1226 = vmatprep.subr.bf16.mxu0 %v1375_v3  ;;  %v329_v43 = vld [vmem:[%s1844_s5 + $0x18] sm:$0xff]  ;;  %v1233_v44 = vpack.c.bf16 %v158_v39, %v157_v38  ;;  %v160_v46 = vld [vmem:[%s1843_s4 + $0x48] sm:$0xff]  ;;  %v330_v48 = vld [vmem:[%s1844_s5 + $0x20] sm:$0xff]  ;;  %63 = vst.msk [vmem:[#allocation2 + $0x8] sm:$0x1] %vm62_vm4, %v1377_v6 }
  0x19   :  { %1258 = vmatpush3.bf16.msra.mxu1 %v1257_v34  ;;  %v1263_v47 = vpack.c.bf16 %v329_v43, %v328_v42  ;;  %v331_v49 = vld [vmem:[%s1844_s5 + $0x28] sm:$0xff]  ;;  %v1236_v50 = vpack.c.bf16 %v160_v46, %v159_v45  ;;  %v161_v51 = vld [vmem:[%s1843_s4 + $0x50] sm:$0xff]  ;;  %v162_v52 = vld [vmem:[%s1843_s4 + $0x58] sm:$0xff] }
  0x1a   :  { %1259 = vmatprep.subr.bf16.mxu1 %v1375_v3  ;;  %v1266_v53 = vpack.c.bf16 %v331_v49, %v330_v48  ;;  %v332_v54 = vld [vmem:[%s1844_s5 + $0x30] sm:$0xff]  ;;  %v333_v55 = vld [vmem:[%s1844_s5 + $0x38] sm:$0xff]  ;;  %v1239_v56 = vpack.c.bf16 %v162_v52, %v161_v51  ;;  %v163_v57 = vld [vmem:[%s1843_s4 + $0x60] sm:$0xff] }
  0x1b   :  { %1228 = vmatpush3.bf16.msra.mxu0 %v1227_v31  ;;  %v1581_v40 = vld [vmem:[%s1862_s7] sm:$0x1]  ;;  %v164_v58 = vld [vmem:[%s1843_s4 + $0x68] sm:$0xff]  ;;  %v1269_v59 = vpack.c.bf16 %v333_v55, %v332_v54  ;;  %v165_v63 = vld [vmem:[%s1843_s4 + $0x70] sm:$0xff] }
  0x1c   :  { %1229 = vmatprep.subr.bf16.mxu0 %v1375_v3  ;;  %1104 = vmatmul.mubr.msk.f32.vlgmr.msra.gmra.mrb[0].mxu1 %vm77_vm1, %v1581_v40  ;;  %v411_v60 = vld [vmem:[%s1848_s9] sm:$0xff]  ;;  %v412_v61 = vld [vmem:[%s1848_s9 + $0x8] sm:$0xff]  ;;  %v1242_v62 = vpack.c.bf16 %v164_v58, %v163_v57  ;;  %v166_v0 = vld [vmem:[%s1843_s4 + $0x78] sm:$0xff] }
  0x1d   :  { %1261 = vmatpush3.bf16.msra.mxu1 %v1260_v41  ;;  %1122 = vmatprep.mubr.msk.f32.mxu1 %vm1376_vm0, %v1377_v6  ;;  %v1272_v1 = vpack.c.bf16 %v412_v61, %v411_v60  ;;  %v488_v2 = vld [vmem:[%s1845_s6] sm:$0xff]  ;;  %v489_v4 = vld [vmem:[%s1845_s6 + $0x8] sm:$0xff]  ;;  %v1245_v5 = vpack.c.bf16 %v166_v0, %v165_v63  ;;  %v490_v9 = vld [vmem:[%s1845_s6 + $0x10] sm:$0xff] }
  0x1e   :  { %1262 = vmatprep.subr.bf16.mxu1 %v1375_v3  ;;  %v67_v7 = vld [vmem:[%s1842_s3] sm:$0x1]  ;;  %v1275_v8 = vpack.c.bf16 %v489_v4, %v488_v2  ;;  %v491_v10 = vld [vmem:[%s1845_s6 + $0x18] sm:$0xff]  ;;  %v493_v14 = vld [vmem:[%s1845_s6 + $0x28] sm:$0xff] }
  0x1f   :  { %1231 = vmatpush3.bf16.msra.mxu0 %v1230_v37  ;;  %v64_v11 = vld [vmem:[%s1863_s27] sm:$0x1]  ;;  %v1278_v12 = vpack.c.bf16 %v491_v10, %v490_v9  ;;  %v494_v16 = vld [vmem:[%s1845_s6 + $0x30] sm:$0xff]  ;;  %v495_v17 = vld [vmem:[%s1845_s6 + $0x38] sm:$0xff] }
  0x20   :  { %1232 = vmatprep.subr.bf16.mxu0 %v1375_v3  ;;  %v492_v13 = vld [vmem:[%s1845_s6 + $0x20] sm:$0xff]  ;;  %v1284_v18 = vpack.c.bf16 %v495_v17, %v494_v16  ;;  %v589_v20 = vld [vmem:[%s1854_s15 + $0x8] sm:$0xff]  ;;  %v590_v21 = vld [vmem:[%s1854_s15 + $0x10] sm:$0xff] }
  0x21   :  { %1264 = vmatpush3.bf16.msra.mxu1 %v1263_v47  ;;  %v1281_v15 = vpack.c.bf16 %v493_v14, %v492_v13  ;;  %v588_v19 = vld [vmem:[%s1854_s15] sm:$0xff]  ;;  %v591_v23 = vld [vmem:[%s1854_s15 + $0x18] sm:$0xff]  ;;  %v581_v48 = vld [vmem:[%s1852_s13 + $0x8] sm:$0xff] }
  0x22   :  { %1265 = vmatprep.subr.bf16.mxu1 %v1375_v3  ;;  %v1287_v22 = vpack.c.bf16 %v589_v20, %v588_v19  ;;  %v1290_v25 = vpack.c.bf16 %v591_v23, %v590_v21  ;;  %v252_v28 = vld [vmem:[%s1850_s11] sm:$0x1]  ;;  %v582_v52 = vld [vmem:[%s1852_s13 + $0x10] sm:$0xff]  ;;  %v585_v57 = vld [vmem:[%s1852_s13 + $0x28] sm:$0xff] }
  0x23   :  { %1234 = vmatpush3.bf16.msra.mxu0 %v1233_v44  ;;  %v76_v35 = vld [vmem:[%s1849_s10] sm:$0x1]  ;;  %v587_v60 = vld [vmem:[%s1852_s13 + $0x38] sm:$0xff]  ;;  %v757_v9 = vld [vmem:[%s1855_s16 + $0x8] sm:$0xff] }
  0x24   :  { %1235 = vmatprep.subr.bf16.mxu0 %v1375_v3  ;;  %v580_v47 = vld [vmem:[%s1852_s13] sm:$0xff] }
  0x25   :  { %1267 = vmatpush3.bf16.msra.mxu1 %v1266_v53  ;;  %v575_v49 = vld [vmem:[%s1856_s17] sm:$0x1]  ;;  %v1293_v51 = vpack.c.bf16 %v581_v48, %v580_v47  ;;  %v583_v53 = vld [vmem:[%s1852_s13 + $0x18] sm:$0xff] }
  0x26   :  { %1268 = vmatprep.subr.bf16.mxu1 %v1375_v3  ;;  %v1296_v55 = vpack.c.bf16 %v583_v53, %v582_v52  ;;  %v748_v23 = vld [vmem:[%s1853_s14] sm:$0xff] }
  0x27   :  { %1237 = vmatpush3.bf16.msra.mxu0 %v1236_v50 }
  0x28   :  { %1238 = vmatprep.subr.bf16.mxu0 %v1375_v3 }
  0x29   :  { %1270 = vmatpush3.bf16.msra.mxu1 %v1269_v59  ;;  %v586_v59 = vld [vmem:[%s1852_s13 + $0x30] sm:$0xff] }
  0x2a   :  { %1271 = vmatprep.subr.bf16.mxu1 %v1375_v3  ;;  %v1302_v61 = vpack.c.bf16 %v587_v60, %v586_v59 }
  0x2b   :  { %1240 = vmatpush3.bf16.msra.mxu0 %v1239_v56  ;;  %v584_v56 = vld [vmem:[%s1852_s13 + $0x20] sm:$0xff] }
  0x2c   :  { %1241 = vmatprep.subr.bf16.mxu0 %v1375_v3  ;;  %1123 = vmatmul.mubr.msk.f32.vlgmr.msra.gmra.mrb[2].mxu1 %vm77_vm1, %v1537_v24  ;;  %v1299_v58 = vpack.c.bf16 %v585_v57, %v584_v56 }
  0x2d   :  { %1273 = vmatpush3.bf16.msra.mxu1 %v1272_v1  ;;  %1129 = vmatprep.mubr.msk.f32.mxu1 %vm1376_vm0, %v1377_v6 }
  0x2e   :  { %1274 = vmatprep.subr.bf16.mxu1 %v1375_v3 }
  0x2f   :  { %1243 = vmatpush3.bf16.msra.mxu0 %v1242_v62  ;;  %v413_v62 = vld [vmem:[%s1851_s12] sm:$0x1] }
  0x30   :  { %1244 = vmatprep.subr.bf16.mxu0 %v1375_v3  ;;  %1130 = vmatmul.mubr.msk.f32.vlgmr.msra.gmra.mrb[4].mxu1 %vm414_vm2, %v67_v7 }
  0x31   :  { %1276 = vmatpush3.bf16.msra.mxu1 %v1275_v8  ;;  %1148 = vmatprep.mubr.msk.f32.mxu1 %vm1376_vm0, %v1377_v6 }
  0x32   :  { %1277 = vmatprep.subr.bf16.mxu1 %v1375_v3 }
  0x33   :  { %1246 = vmatpush3.bf16.msra.mxu0 %v1245_v5 }
  0x34   :  { %1304 = vmatprep.subr.bf16.mxu0 %v1375_v3 }
  0x35   :  { %1279 = vmatpush3.bf16.msra.mxu1 %v1278_v12  ;;  %v759_v12 = vld [vmem:[%s1855_s16 + $0x18] sm:$0xff] }
  0x36   :  { %1085 = vmatmul.mubr.f32.vlgmr.msra.gmra.mrb[0].mxu0 %v64_v11  ;;  %1280 = vmatprep.subr.bf16.mxu1 %v1375_v3  ;;  %v758_v11 = vld [vmem:[%s1855_s16 + $0x10] sm:$0xff] }
  0x37   :  { %1189 = vmatprep.mubr.msk.f32.mxu0 %vm1376_vm0, %v1377_v6  ;;  %v1308_v13 = vpack.c.bf16 %v759_v12, %v758_v11 }
  0x39   :  { %1282 = vmatpush3.bf16.msra.mxu1 %v1281_v15 }
  0x3a   :  { %1283 = vmatprep.subr.bf16.mxu1 %v1375_v3 }
  0x3d   :  { %1285 = vmatpush3.bf16.msra.mxu1 %v1284_v18 }
  0x3e   :  { %1286 = vmatprep.subr.bf16.mxu1 %v1375_v3 }
  0x40   :  { %1149 = vmatmul.mubr.msk.f32.vlgmr.msra.gmra.mrb[6].mxu1 %vm77_vm1, %v1581_v40 }
  0x41   :  { %1159 = vmatprep.mubr.msk.f32.mxu1 %vm1376_vm0, %v1377_v6  ;;  %1288 = vmatpush3.bf16.msra.mxu1 %v1287_v22 }
  0x42   :  { %1289 = vmatprep.subr.bf16.mxu1 %v1375_v3 }
  0x45   :  { %1291 = vmatpush3.bf16.msra.mxu1 %v1290_v25  ;;  %v749_v25 = vld [vmem:[%s1853_s14 + $0x8] sm:$0xff] }
  0x46   :  { %1292 = vmatprep.subr.bf16.mxu1 %v1375_v3 }
  0xef   :  { %v322_v26 = vpop.f32.mrb[0].mxu1 }
  0xf0   :  { %v1105_v27 = vpop.f32.mrb[1].mxu1  ;;  %v1714_v29 = vadd.f32 %v322_v26, %v252_v28  ;;  %v743_v26 = vld [vmem:[%s1856_s17 + $0x1] sm:$0x1]  ;;  %v1311_v28 = vpack.c.bf16 %v749_v25, %v748_v23 }
  0xff   :  { %v400_v30 = vpop.f32.mrb[2].mxu1 }
 0x100   :  { %v401_v31 = vadd.f32 %v400_v30, %v1714_v29  ;;  %v1124_v32 = vpop.f32.mrb[3].mxu1  ;;  %v751_v30 = vld [vmem:[%s1853_s14 + $0x18] sm:$0xff] }
 0x102   :  { %v936_v33 = vmul.f32 -1.442695, %v401_v31 }
 0x103   :  { %v484_v34 = vpop.f32.mrb[4].mxu1 }
 0x104   :  { %1331 = vpow2.f32 %v936_v33  ;;  %v1131_v36 = vpop.f32.mrb[5].mxu1  ;;  %v1763_v63 = vadd.f32 %v484_v34, %v413_v62  ;;  %v752_v33 = vld [vmem:[%s1853_s14 + $0x20] sm:$0xff]  ;;  %v753_v34 = vld [vmem:[%s1853_s14 + $0x28] sm:$0xff] }
 0x105   :  { %v754_v36 = vld [vmem:[%s1853_s14 + $0x30] sm:$0xff] }
 0x109   :  { %v233_v37 = vpop.f32.mrb[0].mxu0 }
 0x10a   :  { %v1322_v38 = vadd.f32 %v233_v37, %v76_v35  ;;  %v1086_v39 = vpop.f32.mrb[1].mxu0  ;;  %v1317_v35 = vpack.c.bf16 %v753_v34, %v752_v33  ;;  %v755_v37 = vld [vmem:[%s1853_s14 + $0x38] sm:$0xff] }
 0x10c   :  { %v933_v41 = vmul.f32 -1.442695, %v1322_v38  ;;  %v1320_v38 = vpack.c.bf16 %v755_v37, %v754_v36 }
 0x10e   :  { %1333 = vpow2.f32 %v933_v41  ;;  %v1332_v42 = vpop.eup %1331 }
 0x10f   :  { %v407_v43 = vadd.f32 1.0, %v1332_v42 }
 0x111   :  { %1335 = vrcp.f32 %v407_v43 }
 0x113   :  { %v562_v0 = vpop.f32.mrb[6].mxu1 }
 0x114   :  { %v563_v1 = vadd.f32 %v562_v0, %v1763_v63  ;;  %v1150_v2 = vpop.f32.mrb[7].mxu1 }
 0x116   :  { %v939_v4 = vmul.f32 -1.442695, %v563_v1 }
 0x118   :  { %v1334_v44 = vpop.eup %1333 }
 0x119   :  { %v240_v45 = vadd.f32 1.0, %v1334_v44 }
 0x11b   :  { %1337 = vrcp.f32 %v240_v45  ;;  %v1336_v46 = vpop.eup %1335 }
 0x11c   :  { %410 = vst.msk [vmem:[#allocation2 + $0x1] sm:$0x1] %vm62_vm4, %v1336_v46  ;;  %1339 = vpow2.f32 %v939_v4 }
 0x125   :  { %v1338_v50 = vpop.eup %1337 }
 0x126   :  { %243 = vst.msk [vmem:[#allocation2] sm:$0x1] %vm62_vm4, %v1338_v50  ;;  %574 = vst.msk [vmem:[#allocation2 + $0x3] sm:$0x1] %vm62_vm4, %v1338_v50  ;;  %vm576_vm5 = vcmp.lt.f32.partialorder %v575_v49, %v1338_v50  ;;  %v1340_v5 = vpop.eup %1339 }
 0x127   :  { %v940_v54 = vsel %vm576_vm5, 1.0, %v1377_v6  ;;  %v569_v7 = vadd.f32 1.0, %v1340_v5 }
 0x128   :  { %579 = vst.msk [vmem:[#allocation2 + $0x6] sm:$0x1] %vm62_vm4, %v940_v54  ;;  %1160 = vmatmul.mubr.msk.f32.vlgmr.msra.gmra.mrb[8].mxu1 %vm60_vm3, %v940_v54 }
 0x129   :  { %1294 = vmatpush3.bf16.msra.mxu1 %v1293_v51  ;;  %1178 = vmatprep.mubr.msk.f32.mxu1 %vm1376_vm0, %v1377_v6  ;;  %1341 = vrcp.f32 %v569_v7 }
 0x12a   :  { %1295 = vmatprep.subr.bf16.mxu1 %v1375_v3 }
 0x12d   :  { %1297 = vmatpush3.bf16.msra.mxu1 %v1296_v55 }
 0x12e   :  { %1298 = vmatprep.subr.bf16.mxu1 %v1375_v3 }
 0x131   :  { %1300 = vmatpush3.bf16.msra.mxu1 %v1299_v58 }
 0x132   :  { %1301 = vmatprep.subr.bf16.mxu1 %v1375_v3 }
 0x133   :  { %v1342_v8 = vpop.eup %1341 }
 0x134   :  { %573 = vst.msk [vmem:[#allocation2 + $0x2] sm:$0x1] %vm572_vm6, %v1342_v8 }
 0x135   :  { %1303 = vmatpush3.bf16.msra.mxu1 %v1302_v61 }
 0x138   :  { %1179 = vmatmul.mubr.msk.f32.vlgmr.msra.gmra.mrb[10].mxu1 %vm77_vm1, %v1537_v24  ;;  %v756_v24 = vld [vmem:[%s1855_s16] sm:$0xff] }
 0x139   :  { %v1305_v10 = vpack.c.bf16 %v757_v9, %v756_v24 }
 0x13b   :  { %1306 = vmatpush3.bf16.msra.mxu0 %v1305_v10 }
 0x13c   :  { %1307 = vmatprep.subr.bf16.mxu0 %v1375_v3 }
 0x13f   :  { %1309 = vmatpush3.bf16.msra.mxu0 %v1308_v13 }
 0x140   :  { %1310 = vmatprep.subr.bf16.mxu0 %v1375_v3 }
 0x1fb   :  { %v661_v14 = vpop.f32.mrb[8].mxu1 }
 0x1fc   :  { %v1161_v15 = vpop.f32.mrb[9].mxu1 }
 0x20b   :  { %v731_v16 = vpop.f32.mrb[10].mxu1 }
 0x20c   :  { %v732_v17 = vadd.f32 %v731_v16, %v661_v14  ;;  %v1180_v18 = vpop.f32.mrb[11].mxu1 }
 0x20e   :  { %v735_v19 = vadd.f32 %v732_v17, %v1714_v29  ;;  %v750_v29 = vld [vmem:[%s1853_s14 + $0x10] sm:$0xff]  ;;  %s1378_s14 = smov [#allocation2]  }
 0x20f   :  { %v1314_v32 = vpack.c.bf16 %v751_v30, %v750_v29  ;;  %s921_s6 = sshll.u32 %s1378_s14, 4  ;;  %s922_s6 = int_to_ptr.vmem [resolvable:$true] %s921_s6 }
 0x210   :  { %v943_v20 = vmul.f32 -1.442695, %v735_v19  ;;  %s1351_s2 = scalar_lea.vmem %s922_s6, 256  ;;  %p1356_p1 = scmp.lt.s32.totalorder %s922_s6, %s922_s6 }
 0x211   :  { %p1352_p0 = scmp.ne.s32.totalorder %s922_s6, %s1351_s2  ;;  %p1357_p2 = scmp.lt.s32.totalorder %s1351_s2, %s1351_s2 }
 0x212   :  { %1343 = vpow2.f32 %v943_v20 }
 0x213   :  { %p1358_p3 = por %p1357_p2, %p1356_p1 }
 0x215   :  { %p1359_p4 = pnand %p1358_p3, %p1352_p0 }
 0x21c   :  { %v1344_v21 = vpop.eup %1343 }
 0x21d   :  { %v739_v22 = vadd.f32 1.0, %v1344_v21 }
 0x21f   :  { %1345 = vrcp.f32 %v739_v22 }
 0x229   :  { %v1346_v27 = vpop.eup %1345 }
 0x22a   :  { %742 = vst.msk [vmem:[#allocation2 + $0x4] sm:$0x1] %vm62_vm4, %v1346_v27  ;;  %vm744_vm7 = vcmp.lt.f32.partialorder %v743_v26, %v1346_v27 }
 0x22b   :  { %v944_v31 = vsel %vm744_vm7, 1.0, %v1377_v6 }
 0x22c   :  { %747 = vst.msk [vmem:[#allocation2 + $0x7] sm:$0x1] %vm62_vm4, %v944_v31  ;;  %1190 = vmatmul.mubr.msk.f32.vlgmr.msra.gmra.mrb[2].mxu0 %vm60_vm3, %v944_v31 }
 0x22d   :  { %1312 = vmatpush3.bf16.msra.mxu0 %v1311_v28  ;;  %1208 = vmatprep.mubr.msk.f32.mxu0 %vm1376_vm0, %v1377_v6 }
 0x22e   :  { %1313 = vmatprep.subr.bf16.mxu0 %v1375_v3 }
 0x231   :  { %1315 = vmatpush3.bf16.msra.mxu0 %v1314_v32 }
 0x232   :  { %1316 = vmatprep.subr.bf16.mxu0 %v1375_v3 }
 0x235   :  { %1318 = vmatpush3.bf16.msra.mxu0 %v1317_v35 }
 0x236   :  { %1319 = vmatprep.subr.bf16.mxu0 %v1375_v3  ;;  %v911_v3 = vld [vmem:[%s1856_s17 + $0x2] sm:$0x1] }
 0x239   :  { %1321 = vmatpush3.bf16.msra.mxu0 %v1320_v38 }
 0x23c   :  { %1209 = vmatmul.mubr.msk.f32.vlgmr.msra.gmra.mrb[4].mxu0 %vm77_vm1, %v1581_v40 }
 0x2ff   :  { %v829_v39 = vpop.f32.mrb[2].mxu0 }
 0x300   :  { %v1191_v41 = vpop.f32.mrb[3].mxu0 }
 0x30f   :  { %v899_v42 = vpop.f32.mrb[4].mxu0 }
 0x310   :  { %v900_v43 = vadd.f32 %v899_v42, %v829_v39  ;;  %v1210_v44 = vpop.f32.mrb[5].mxu0 }
 0x312   :  { %v903_v45 = vadd.f32 %v900_v43, %v1763_v63 }
 0x314   :  { %v947_v46 = vmul.f32 -1.442695, %v903_v45 }
 0x316   :  { %1347 = vpow2.f32 %v947_v46 }
 0x320   :  { %v1348_v47 = vpop.eup %1347 }
 0x321   :  { %v907_v48 = vadd.f32 1.0, %v1348_v47 }
 0x323   :  { %1349 = vrcp.f32 %v907_v48 }
 0x32d   :  { %v1350_v49 = vpop.eup %1349 }
 0x32e   :  { %910 = vst.msk [vmem:[#allocation2 + $0x5] sm:$0x1] %vm572_vm6, %v1350_v49  ;;  %vm912_vm8 = vcmp.lt.f32.partialorder %v911_v3, %v1350_v49 }
 0x32f   :  { %v948_v40 = vsel %vm912_vm8, 1.0, %v1377_v6 }
 0x330   :  { %915 = vst.msk [vmem:[#allocation2 + $0x8] sm:$0x1] %vm572_vm6, %v948_v40 }
 0x331   :  { %1362 = shalt.err (!%p1359_p4)
}
 0x332   :  { %s1363_s17 = scalar_lea.hbm %s1857_s18, 256 }
 0x333   :  { %p1364_p5 = scmp.ne.s32.totalorder %s1857_s18, %s1363_s17  ;;  %p1367_p6 = scmp.lt.u32.totalorder %s1363_s17, %s1857_s18 }
 0x335   :  { %p1369_p7 = pnand %p1367_p6, %p1364_p5 }
 0x337   :  { %1372 = shalt.err (!%p1369_p7)
}
 0x338   :  { %s1379_s26 = smov 128   ;;  %s1380_s10 = smov 8  }
 0x339   :  { %927 = dma.vmem_to_hbm [thread:$0]  %s922_s6, 256, %s1857_s18, [#allocation3], %s1379_s26, %s1379_s26, %s1380_s10  }
 0x33a   :  { %1373 = dma.done.wait [#allocation3], 256  }
 0x33b   :  { %1374 = vsyncadd [#allocation3], 4294967040 }
 0x33c   :  { %931 = vsyncpa [#allocation3], 1 }

</bundles_post_ra>
